<compile_context>
chip_gen: v6e
topology: v6e:2x2x1
jax: 0.10.0
libtpu: 0.0.40
codegen_flags: <defaults>
</compile_context>

<pallas_src>
import functools

import jax
import jax.numpy as jnp
from jax.experimental import pallas as pl
from jax.experimental.pallas import tpu as pltpu


def _round_up(v, m):
    return ((v + m - 1) // m) * m


def _fused_mlp_kernel(x_ref, w_ref, b_ref, o_ref, *, num_layers):
    """All layers fused; activations never leave the core.

    x_ref: (tm, D)      bf16  input rows for this grid step
    w_ref: (L, D, D)    bf16  zero-padded, layer-stacked weights (W^T layout)
    b_ref: (L, 1, D)    f32   zero-padded, layer-stacked biases
    o_ref: (tm, D)      f32   padded output rows
    """
    h = x_ref[...]                                   # bf16 activations
    for l in range(num_layers):                      # static unroll (L is small)
        acc = jnp.dot(h, w_ref[l], preferred_element_type=jnp.float32)  # MXU
        acc = jnp.maximum(acc + b_ref[l], 0.0)       # f32 bias + ReLU (VPU)
        if l + 1 < num_layers:
            h = acc.astype(x_ref.dtype)              # bf16 feed to next MXU pass
        else:
            o_ref[...] = acc.astype(o_ref.dtype)     # lane-dense f32 store


def mlp_forward(x, params, *, tm=128, compute_dtype=jnp.bfloat16):
    """x: (M, d_in) f32; params: list of (w: (d_in, d_out) f32, b: (1, d_out) f32)."""
    M, d_in0 = x.shape
    num_layers = len(params)
    dims = [d_in0] + [w.shape[1] for (w, _) in params]
    D = _round_up(max(dims), 128)              # common padded feature width
    tm = min(tm, _round_up(M, 8))              # keep >=2 grid steps for M>=256
    Mp = _round_up(M, tm)
    out_dim = params[-1][0].shape[1]

    # Pad & pack operands (zero padding is exact for Linear+ReLU chains).
    x_p = jnp.zeros((Mp, D), compute_dtype).at[:M, :d_in0].set(
        x.astype(compute_dtype))
    w_stack = jnp.zeros((num_layers, D, D), compute_dtype)
    b_stack = jnp.zeros((num_layers, 1, D), jnp.float32)
    for l, (w, b) in enumerate(params):
        di, do = w.shape
        w_stack = w_stack.at[l, :di, :do].set(w.astype(compute_dtype))
        b_stack = b_stack.at[l, :, :do].set(b.astype(jnp.float32))

    nbytes = lambda a: a.size * a.dtype.itemsize
    cost = pl.CostEstimate(
        flops=2 * Mp * D * D * num_layers,
        transcendentals=0,
        bytes_accessed=nbytes(x_p) + nbytes(w_stack) + nbytes(b_stack)
        + Mp * D * 4,
    )

    out = pl.pallas_call(
        functools.partial(_fused_mlp_kernel, num_layers=num_layers),
        out_shape=jax.ShapeDtypeStruct((Mp, D), jnp.float32),
        grid_spec=pltpu.PrefetchScalarGridSpec(
            num_scalar_prefetch=0,
            grid=(Mp // tm,),   # rows only; "parallel" so v7x can use both TCs
            in_specs=[
                pl.BlockSpec((tm, D), lambda i: (i, 0)),               # x rows
                pl.BlockSpec((num_layers, D, D), lambda i: (0, 0, 0)),  # W stack
                pl.BlockSpec((num_layers, 1, D), lambda i: (0, 0, 0)),  # b stack
            ],
            out_specs=pl.BlockSpec((tm, D), lambda i: (i, 0)),
        ),
        compiler_params=pltpu.CompilerParams(
            dimension_semantics=("parallel",),
        ),
        cost_estimate=cost,
    )(x_p, w_stack, b_stack)

    return out[:M, :out_dim]


def init_mlp_params(key, input_dim, hidden_dim, embed_dim, num_layers):
    """Deterministic PyTorch-Linear-style init: U(-1/sqrt(fan_in), +1/sqrt(fan_in))."""
    params = []
    for i in range(num_layers):
        d_in = input_dim if i == 0 else hidden_dim
        d_out = embed_dim if i == num_layers - 1 else hidden_dim
        key, kw, kb = jax.random.split(key, 3)
        bound = 1.0 / jnp.sqrt(jnp.float32(d_in))
        # store weight as (d_in, d_out) == W^T relative to torch's (out, in)
        w = jax.random.uniform(kw, (d_in, d_out), jnp.float32, -bound, bound)
        b = jax.random.uniform(kb, (1, d_out), jnp.float32, -bound, bound)
        params.append((w, b))
    return params


if __name__ == "__main__":
    # Small, tile-friendly shapes consistent with the module's forward.
    batch = 256
    input_dim, hidden_dim, embed_dim, num_layers = 128, 256, 128, 3

    key = jax.random.PRNGKey(0)
    key, kx = jax.random.split(key)
    x = jax.random.normal(kx, (batch, input_dim), jnp.float32)
    params = init_mlp_params(key, input_dim, hidden_dim, embed_dim, num_layers)

    out = jax.block_until_ready(mlp_forward(x, params))

    # Reference on the same precision path (bf16 inputs/weights, f32 accumulate,
    # f32 bias + ReLU). end_up_with_fc=False, bn=False, act='ReLU' => ReLU after
    # every Linear, including the last.
    ref = x
    for (w, b) in params:
        acc = jnp.dot(ref.astype(jnp.bfloat16), w.astype(jnp.bfloat16),
                      preferred_element_type=jnp.float32)
        ref = jnp.maximum(acc + b, 0.0)

    assert out.shape == (batch, embed_dim)
    assert jnp.allclose(out, ref, atol=1e-2, rtol=1e-2), float(
        jnp.max(jnp.abs(out - ref)))

    print("KERNEL_OK")
</pallas_src>

<mosaic_0001>
module attributes {stable_mosaic.version = 11 : i64} {
  func.func @_fused_mlp_kernel(%arg0: i32, %arg1: memref<128x256xbf16, #tpu.memory_space<vmem>>, %arg2: memref<3x256x256xbf16, #tpu.memory_space<vmem>>, %arg3: memref<3x1x256xf32, #tpu.memory_space<vmem>>, %arg4: memref<128x256xf32, #tpu.memory_space<vmem>>) attributes {dimension_semantics = [#tpu.dimension_semantics<parallel>], iteration_bounds = array<i64: 2>, scalar_prefetch = 0 : i64, scratch_operands = 0 : i64, tpu.core_type = #tpu.core_type<tc>, window_params = [{transform_indices = @transform_0, window_bounds = array<i64: 128, 256>}, {pipeline_mode = #tpu.pipeline_mode<synchronous>, transform_indices = @transform_1, window_bounds = array<i64: 3, 256, 256>}, {pipeline_mode = #tpu.pipeline_mode<synchronous>, transform_indices = @transform_2, window_bounds = array<i64: 3, 1, 256>}, {transform_indices = @transform_3, window_bounds = array<i64: 128, 256>}]} {
    %c0 = arith.constant 0 : index
    %c0_0 = arith.constant 0 : index
    %0 = vector.load %arg1[%c0, %c0_0] : memref<128x256xbf16, #tpu.memory_space<vmem>>, vector<128x256xbf16>
    %c0_1 = arith.constant 0 : index
    %c0_2 = arith.constant 0 : index
    %c0_3 = arith.constant 0 : index
    %1 = vector.load %arg2[%c0_1, %c0_2, %c0_3] : memref<3x256x256xbf16, #tpu.memory_space<vmem>>, vector<1x256x256xbf16>
    %2 = vector.shape_cast %1 : vector<1x256x256xbf16> to vector<256x256xbf16>
    %cst = arith.constant dense<0.000000e+00> : vector<128x256xf32>
    %3 = tpu.matmul %0, %2, %cst {dimension_numbers = #tpu.dot_dimension_numbers<[1], [0], [0], [1], [0, 0, 1, 1], [], []>} : vector<128x256xbf16>, vector<256x256xbf16>, vector<128x256xf32> -> vector<128x256xf32>
    %c0_4 = arith.constant 0 : index
    %c0_5 = arith.constant 0 : index
    %c0_6 = arith.constant 0 : index
    %4 = vector.load %arg3[%c0_4, %c0_5, %c0_6] : memref<3x1x256xf32, #tpu.memory_space<vmem>>, vector<1x1x256xf32>
    %5 = vector.shape_cast %4 : vector<1x1x256xf32> to vector<1x256xf32>
    %6 = vector.broadcast %5 : vector<1x256xf32> to vector<128x256xf32>
    %7 = arith.addf %3, %6 : vector<128x256xf32>
    %cst_7 = arith.constant 0.000000e+00 : f32
    %8 = vector.broadcast %cst_7 : f32 to vector<128x256xf32>
    %9 = arith.maximumf %7, %8 : vector<128x256xf32>
    %10 = arith.truncf %9 : vector<128x256xf32> to vector<128x256xbf16>
    %c1 = arith.constant 1 : index
    %c0_8 = arith.constant 0 : index
    %c0_9 = arith.constant 0 : index
    %11 = vector.load %arg2[%c1, %c0_8, %c0_9] : memref<3x256x256xbf16, #tpu.memory_space<vmem>>, vector<1x256x256xbf16>
    %12 = vector.shape_cast %11 : vector<1x256x256xbf16> to vector<256x256xbf16>
    %cst_10 = arith.constant dense<0.000000e+00> : vector<128x256xf32>
    %13 = tpu.matmul %10, %12, %cst_10 {dimension_numbers = #tpu.dot_dimension_numbers<[1], [0], [0], [1], [0, 0, 1, 1], [], []>} : vector<128x256xbf16>, vector<256x256xbf16>, vector<128x256xf32> -> vector<128x256xf32>
    %c1_11 = arith.constant 1 : index
    %c0_12 = arith.constant 0 : index
    %c0_13 = arith.constant 0 : index
    %14 = vector.load %arg3[%c1_11, %c0_12, %c0_13] : memref<3x1x256xf32, #tpu.memory_space<vmem>>, vector<1x1x256xf32>
    %15 = vector.shape_cast %14 : vector<1x1x256xf32> to vector<1x256xf32>
    %16 = vector.broadcast %15 : vector<1x256xf32> to vector<128x256xf32>
    %17 = arith.addf %13, %16 : vector<128x256xf32>
    %cst_14 = arith.constant 0.000000e+00 : f32
    %18 = vector.broadcast %cst_14 : f32 to vector<128x256xf32>
    %19 = arith.maximumf %17, %18 : vector<128x256xf32>
    %20 = arith.truncf %19 : vector<128x256xf32> to vector<128x256xbf16>
    %c2 = arith.constant 2 : index
    %c0_15 = arith.constant 0 : index
    %c0_16 = arith.constant 0 : index
    %21 = vector.load %arg2[%c2, %c0_15, %c0_16] : memref<3x256x256xbf16, #tpu.memory_space<vmem>>, vector<1x256x256xbf16>
    %22 = vector.shape_cast %21 : vector<1x256x256xbf16> to vector<256x256xbf16>
    %cst_17 = arith.constant dense<0.000000e+00> : vector<128x256xf32>
    %23 = tpu.matmul %20, %22, %cst_17 {dimension_numbers = #tpu.dot_dimension_numbers<[1], [0], [0], [1], [0, 0, 1, 1], [], []>} : vector<128x256xbf16>, vector<256x256xbf16>, vector<128x256xf32> -> vector<128x256xf32>
    %c2_18 = arith.constant 2 : index
    %c0_19 = arith.constant 0 : index
    %c0_20 = arith.constant 0 : index
    %24 = vector.load %arg3[%c2_18, %c0_19, %c0_20] : memref<3x1x256xf32, #tpu.memory_space<vmem>>, vector<1x1x256xf32>
    %25 = vector.shape_cast %24 : vector<1x1x256xf32> to vector<1x256xf32>
    %26 = vector.broadcast %25 : vector<1x256xf32> to vector<128x256xf32>
    %27 = arith.addf %23, %26 : vector<128x256xf32>
    %cst_21 = arith.constant 0.000000e+00 : f32
    %28 = vector.broadcast %cst_21 : f32 to vector<128x256xf32>
    %29 = arith.maximumf %27, %28 : vector<128x256xf32>
    %c0_22 = arith.constant 0 : index
    %c0_23 = arith.constant 0 : index
    %30 = vector.load %arg4[%c0_22, %c0_23] : memref<128x256xf32, #tpu.memory_space<vmem>>, vector<128x256xf32>
    tpu.vector_store %arg4[%c0_22, %c0_23], %29 {strides = array<i32>} : memref<128x256xf32, #tpu.memory_space<vmem>>, vector<128x256xf32>,
    return
  }
  func.func @transform_0(%arg0: i32) -> (i32, i32) {
    %c0_i32 = arith.constant 0 : i32
    %c0_i32_0 = arith.constant 0 : i32
    return %arg0, %c0_i32 : i32, i32
  }
  func.func @transform_1(%arg0: i32) -> (i32, i32, i32) {
    %c0_i32 = arith.constant 0 : i32
    %c0_i32_0 = arith.constant 0 : i32
    %c0_i32_1 = arith.constant 0 : i32
    %c0_i32_2 = arith.constant 0 : i32
    return %c0_i32, %c0_i32_0, %c0_i32_1 : i32, i32, i32
  }
  func.func @transform_2(%arg0: i32) -> (i32, i32, i32) {
    %c0_i32 = arith.constant 0 : i32
    %c0_i32_0 = arith.constant 0 : i32
    %c0_i32_1 = arith.constant 0 : i32
    %c0_i32_2 = arith.constant 0 : i32
    return %c0_i32, %c0_i32_0, %c0_i32_1 : i32, i32, i32
  }
  func.func @transform_3(%arg0: i32) -> (i32, i32) {
    %c0_i32 = arith.constant 0 : i32
    %c0_i32_0 = arith.constant 0 : i32
    return %arg0, %c0_i32 : i32, i32
  }
}

</mosaic_0001>

<bundles_post_ra>
// kernel: tpu_custom_call.1
= control target key start
LH: loop header
LB: loop body
LE: loop exit
PB: predicated region body
PF: predicated region fallthrough
CT: control target
= control target key end

     0   :  { %8 = vsyncpa [#allocation3], 0  ;;  %s2594_s0 = inlined_call_operand.hbm [shape: bf16[256,256], index: 0, kind: input, shape index: {}]   ;;  %s2595_s1 = inlined_call_operand.hbm [shape: bf16[3,256,256], index: 1, kind: input, shape index: {}]   ;;  %s2596_s2 = inlined_call_operand.hbm [shape: f32[3,1,256], index: 2, kind: input, shape index: {}]   ;;  %s2597_s3 = inlined_call_operand.hbm [shape: f32[256,256], index: 3, kind: output, shape index: {}]  }
   0x1   :  { %10 = vsyncpa [#allocation3 + $0x1], 0 }
   0x2   :  { %11 = vsyncpa [#allocation6], 0 }
   0x3   :  { %12 = vsyncpa [#allocation4], 0 }
   0x4   :  { %14 = vsyncpa [#allocation4 + $0x1], 0  ;;  %s2128_s12 = smov 0   ;;  %s2130_s13 = smov 0  }
   0x5   :  { %s2132_s14 = smov 0   ;;  %s2134_s15 = smov 0  }
   0x6 LB: > { %s2149_s16 = sadd.s32 4294967295, %s2096_s15   ;;  %s1539_s17 = sadd.s32 4294967294, %s2096_s15   ;;  %s2096_s15 = sphi %s2134_s15, %s2618_s15   ;;  %s2092_s14 = sphi %s2132_s14, %s2617_s14   ;;  %s2088_s13 = sphi %s2130_s13, %s2616_s13   ;;  %s2084_s12 = sphi %s2128_s12, %s2615_s12  }
   0x7   : > { %p40_p0 = scmp.ne.s32.totalorder %s2088_s13, %s2084_s12  ;;  %p2598_p1 = scmp.eq.s32.totalorder %s2149_s16, 0 }
   0x8   : > { %p106_p2 = scmp.eq.s32.totalorder %s2149_s16, 1  ;;  %p112_p3 = scmp.eq.s32.totalorder %s1539_s17, 1 }
   0x9   : > { %p2158_p4 = por %p2598_p1, %p40_p0  ;;  %p1540_p5 = scmp.ge.s32.totalorder %s2096_s15, 1 }
   0xa   : > { %p2163_p6 = por %p112_p3, %p40_p0  ;;  %p119_p7 = scmp.lt.s32.totalorder %s2096_s15, 3 }
   0xb   : > { %s2602_s18 = scalar_select %p2158_p4, 1, 0 }
   0xc   : > { %s2603_s19 = scalar_select %p2163_p6, 1, 0 }
   0xd   : > { %p2168_p8 = pnand %p1540_p5, %p119_p7  ;;  %s2098_s21 = smov [#allocation5]  }
   0xe   : > { %s131_s22 = sshll.u32 %s2098_s21, 4  ;;  %s2099_s24 = smov [#allocation7]   ;;  %s132_s22 = int_to_ptr.vmem [resolvable:$true] %s131_s22 }
   0xf   : > { %s2604_s20 = scalar_select %p2168_p8, 1, 0 }
  0x10   : > { %p1719_p9 = pneg %p2168_p8  ;;  %s144_s25 = sshll.u32 %s2099_s24, 4  ;;  %s145_s25 = int_to_ptr.vmem [resolvable:$true] %s144_s25 }
  0x11   : > { %s1959_s26 = scalar_lea.vmem %s132_s22, 12288  ;;  %p1967_p5 = scmp.lt.s32.totalorder %s132_s22, %s132_s22 }
  0x12   : > { %p2177_p11 = pnand %p1719_p9, %p2598_p1  ;;  %p1960_p13 = scmp.ne.s32.totalorder %s132_s22, %s1959_s26 }
  0x13   : > { %p1968_p7 = scmp.lt.s32.totalorder %s1959_s26, %s1959_s26 }
  0x14   : > { %p1950_p12 = pneg %p2177_p11 }
  0x15   : > { %p1969_p10 = por %p1968_p7, %p1967_p5 }
  0x16   : > { %p1962_p0 = pnand %p1960_p13, %p1950_p12 }
  0x18   : > { %p1963_p3 = pneg %p1962_p0 }
  0x1a   : > { %p1970_p9 = pnand %p1969_p10, %p1963_p3 }
  0x1c   : > { %1973 = shalt.err (!%p1970_p9)
}
  0x1d   : > { %s2100_s27 = smov 128   ;;  %s2101_s28 = smov 8  }
  0x1e   : > { %1722 = dma.hbm_to_vmem [thread:$0]  (!%p2177_p11), %s2595_s1, 12288, %s132_s22, [#allocation6], %s2100_s27, %s2100_s27, %s2101_s28  }
  0x1f   : > { %s1985_s4 = scalar_lea.vmem %s145_s25, 96  ;;  %p1993_p10 = scmp.lt.s32.totalorder %s145_s25, %s145_s25 }
  0x20   : > { %p1986_p13 = scmp.ne.s32.totalorder %s145_s25, %s1985_s4  ;;  %p1994_p3 = scmp.lt.s32.totalorder %s1985_s4, %s1985_s4 }
  0x22   : > { %p1988_p0 = pnand %p1986_p13, %p1950_p12  ;;  %p1995_p7 = por %p1994_p3, %p1993_p10 }
  0x24   : > { %p1989_p5 = pneg %p1988_p0 }
  0x26   : > { %p1996_p9 = pnand %p1995_p7, %p1989_p5 }
  0x28   : > { %1999 = shalt.err (!%p1996_p9)
}
  0x29   : > { %s2102_s5 = smov 32   ;;  %s2103_s6 = smov 2  }
  0x2a   : > { %1725 = dma.hbm_to_vmem [thread:$0]  (!%p2177_p11), %s2596_s2, 96, %s145_s25, [#allocation6], %s2102_s5, %s2102_s5, %s2103_s6  }
  0x2b   : > { %s2203_s9 = sadd.s32 1, %s2096_s15   ;;  %s27_s11 = sadd.s32 1, %s2092_s14 }
  0x2c   : > { %s24_s10 = ssub.s32 %s2096_s15, %s2203_s9  ;;  %p34_p13 = scmp.ne.s32.totalorder %s2092_s14, %s2088_s13 }
  0x2d   : > { %p25_p12 = scmp.eq.s32.totalorder %s24_s10, 0  ;;  %p35_p0 = scmp.eq.s32.totalorder %s2096_s15, 0 }
  0x2e   : > { %p2216_p10 = por %p106_p2, %p34_p13  ;;  %p1736_p3 = scmp.lt.s32.totalorder %s2096_s15, 2 }
  0x2f   : > { %s2212_s17 = scalar_select %p25_p12, %s2092_s14, %s27_s11  }
  0x30   : > { %p36_p5 = por %p35_p0, %p34_p13  ;;  %s158_s22 = sand.u32 1, %s2092_s14  }
  0x31   : > { %s2606_s21 = scalar_select %p2216_p10, 1, 0 }
  0x32   : > { %s1544_s23 = sshll.u32 %s158_s22, 7  ;;  %s1672_s24 = sshll.u32 %s2096_s15, 11 }
  0x33   : > { %s2226_s29 = scalar_lea.hbm %s2594_s0, %s1672_s24  ;;  %s162_s30 = scalar_lea.vmem [#allocation2], %s1544_s23 }
  0x34   : > { %s170_s4 = sshll.u32 %s162_s30, 4  ;;  %p2230_p2 = pnand %p1736_p3, %p36_p5  ;;  %s2228_s4 = int_to_ptr.vmem [resolvable:$true] %s170_s4 }
  0x35   : > { %s2234_s6 = scalar_lea.sflag [#allocation3], %s158_s22  ;;  %s2000_s7 = scalar_lea.hbm %s2226_s29, 2048 }
  0x36   : > { %p2001_p11 = scmp.ne.s32.totalorder %s2226_s29, %s2000_s7  ;;  %p2002_p7 = pneg %p2230_p2 }
  0x37   : > { %s2005_s11 = scalar_lea.hbm %s2594_s0, 4096  ;;  %p2006_p13 = scmp.lt.s32.totalorder %s2226_s29, %s2594_s0 }
  0x38   : > { %p2003_p9 = pnand %p2002_p7, %p2001_p11  ;;  %p2007_p0 = scmp.lt.s32.totalorder %s2005_s11, %s2000_s7 }
  0x3a   : > { %p2004_p12 = pneg %p2003_p9  ;;  %p2008_p5 = por %p2007_p0, %p2006_p13 }
  0x3c   : > { %p2009_p3 = pnand %p2008_p5, %p2004_p12 }
  0x3e   : > { %2012 = shalt.err (!%p2009_p3)
}
  0x3f   : > { %s2013_s22 = scalar_lea.vmem %s2228_s4, 2048  ;;  %s2104_s25 = smov [#allocation2]  }
  0x40   : > { %p2014_p1 = scmp.ne.s32.totalorder %s2228_s4, %s2013_s22  ;;  %s2018_s26 = sshll.u32 %s2104_s25, 4  ;;  %s2019_s26 = int_to_ptr.vmem [resolvable:$false] %s2018_s26 }
  0x41   : > { %s2020_s30 = scalar_lea.vmem %s2019_s26, 4096  ;;  %p2021_p9 = scmp.lt.s32.totalorder %s2228_s4, %s2019_s26 }
  0x42   : > { %p2016_p6 = pnand %p2014_p1, %p2002_p7  ;;  %p2022_p10 = scmp.lt.s32.totalorder %s2020_s30, %s2013_s22 }
  0x44   : > { %p2017_p11 = pneg %p2016_p6  ;;  %p2023_p4 = por %p2022_p10, %p2021_p9 }
  0x46   : > { %p2024_p8 = pnand %p2023_p4, %p2017_p11 }
  0x48   : > { %2027 = shalt.err (!%p2024_p8)
}
  0x49   : > { %1729 = dma.hbm_to_vmem [thread:$0]  (!%p2230_p2), %s2226_s29, 2048, %s2228_s4, %s2234_s6, %s2100_s27, %s2100_s27, %s2101_s28  }
  0x4a   : > { %p2608_p1 = scmp.ne.s32.totalorder %s2604_s20, 0 }
  0x4b   : > { %s2261_s7 = sand.u32 (!%p2608_p1), 1, %s2088_s13   ;;  %p2609_p4 = scmp.ne.s32.totalorder (!%p2608_p1), %s2602_s18, 0 }
  0x4c   : > { %182 = sbr.rel (%p2608_p1) target bundleno = 835 (0x343), region = 32  ;;  %s1549_s8 = sshll.u32 (!%p2608_p1), %s2261_s7, 7 }
  0x4d   : > { %s185_s10 = scalar_lea.sflag (!%p2608_p1), [#allocation3], %s2261_s7  ;;  %s2265_s11 = scalar_lea.vmem (!%p2608_p1), [#allocation2], %s1549_s8 }
  0x51   : > { %2071 = dma.done.wait (%p2609_p4), %s185_s10, 2048  }
  0x52   : > { %2073 = vsyncadd (%p2609_p4), %s185_s10, 4294965248  ;;  %p2610_p6 = scmp.eq.s32.totalorder %s2149_s16, 0 }
  0x54   : > { %2075 = dma.done.wait (%p2610_p6), [#allocation6], 12384   ;;  %p2611_p8 = pmov %p2610_p6 }
  0x55   : > { %v1780_v0 = vld [vmem:[#allocation5 + $0x74] ss:$8 sps:$4 sm:$0xff]   ;;  %v1782_v1 = vld [vmem:[#allocation5 + $0x70] ss:$8 sps:$4 sm:$0xff]   ;;  %v1783_v2 = vld [vmem:[#allocation5 + $0x64] ss:$8 sps:$4 sm:$0xff]  }
  0x56   : > { %2077 = vsyncadd (%p2611_p8), [#allocation6], 4294954912  ;;  %521 = vmatprep.subr.bf16.mxu0 %v1780_v0  ;;  %v1785_v3 = vld [vmem:[#allocation5 + $0x60] ss:$8 sps:$4 sm:$0xff]   ;;  %v1786_v4 = vld [vmem:[#allocation5 + $0x54] ss:$8 sps:$4 sm:$0xff]  }
  0x57   : > { %522 = vmatpush1.bf16.msra.mxu0 %v1782_v1  ;;  %v1788_v5 = vld [vmem:[#allocation5 + $0x50] ss:$8 sps:$4 sm:$0xff]   ;;  %v1789_v6 = vld [vmem:[#allocation5 + $0x44] ss:$8 sps:$4 sm:$0xff]   ;;  %v1791_v7 = vld [vmem:[#allocation5 + $0x40] ss:$8 sps:$4 sm:$0xff]  }
  0x58   : > { %523 = vmatprep.subr.bf16.mxu0 %v1783_v2  ;;  %v1792_v8 = vld [vmem:[#allocation5 + $0x34] ss:$8 sps:$4 sm:$0xff]   ;;  %v1794_v9 = vld [vmem:[#allocation5 + $0x30] ss:$8 sps:$4 sm:$0xff]   ;;  %v1795_v10 = vld [vmem:[#allocation5 + $0x24] ss:$8 sps:$4 sm:$0xff]  }
  0x59   : > { %v1797_v11 = vld [vmem:[#allocation5 + $0x20] ss:$8 sps:$4 sm:$0xff]   ;;  %v1798_v12 = vld [vmem:[#allocation5 + $0x14] ss:$8 sps:$4 sm:$0xff]   ;;  %v1830_v13 = vld [vmem:[%s2265_s11 + $0x4] ss:$8 sps:$4 sm:$0xff]  }
  0x5a   : > { %v1800_v14 = vld [vmem:[#allocation5 + $0x10] ss:$8 sps:$4 sm:$0xff]   ;;  %v1801_v15 = vld [vmem:[#allocation5 + $0x4] ss:$8 sps:$4 sm:$0xff]   ;;  %553 = vmatprep.mubr.bf16.mxu0 %v1830_v13  ;;  %v1803_v16 = vld [vmem:[#allocation5] ss:$8 sps:$4 sm:$0xff]  }
  0x5b   : > { %524 = vmatpush1.bf16.msra.mxu0 %v1785_v3  ;;  %v1804_v17 = vld [vmem:[#allocation5 + $0xf4] ss:$8 sps:$4 sm:$0xff]   ;;  %v1806_v18 = vld [vmem:[#allocation5 + $0xf0] ss:$8 sps:$4 sm:$0xff]   ;;  %v1807_v19 = vld [vmem:[#allocation5 + $0xe4] ss:$8 sps:$4 sm:$0xff]  }
  0x5c   : > { %525 = vmatprep.subr.bf16.mxu0 %v1786_v4  ;;  %v1852_v20 = vld [vmem:[#allocation5 + $0x174] ss:$8 sps:$4 sm:$0xff]   ;;  %v1854_v21 = vld [vmem:[#allocation5 + $0x170] ss:$8 sps:$4 sm:$0xff]   ;;  %v1809_v22 = vld [vmem:[#allocation5 + $0xe0] ss:$8 sps:$4 sm:$0xff]  }
  0x5d   : > { %888 = vmatprep.subr.bf16.mxu1 %v1852_v20  ;;  %v1855_v23 = vld [vmem:[#allocation5 + $0x164] ss:$8 sps:$4 sm:$0xff]   ;;  %v1810_v24 = vld [vmem:[#allocation5 + $0xd4] ss:$8 sps:$4 sm:$0xff]   ;;  %v1857_v25 = vld [vmem:[#allocation5 + $0x160] ss:$8 sps:$4 sm:$0xff]  }
  0x5e   : > { %889 = vmatpush1.bf16.msra.mxu1 %v1854_v21  ;;  %v1858_v26 = vld [vmem:[#allocation5 + $0x154] ss:$8 sps:$4 sm:$0xff]   ;;  %v1812_v27 = vld [vmem:[#allocation5 + $0xd0] ss:$8 sps:$4 sm:$0xff]   ;;  %v1813_v28 = vld [vmem:[#allocation5 + $0xc4] ss:$8 sps:$4 sm:$0xff]  }
  0x5f   : > { %526 = vmatpush1.bf16.msra.mxu0 %v1788_v5  ;;  %890 = vmatprep.subr.bf16.mxu1 %v1855_v23  ;;  %v1860_v29 = vld [vmem:[#allocation5 + $0x150] ss:$8 sps:$4 sm:$0xff]   ;;  %v1861_v30 = vld [vmem:[#allocation5 + $0x144] ss:$8 sps:$4 sm:$0xff]   ;;  %v1815_v31 = vld [vmem:[#allocation5 + $0xc0] ss:$8 sps:$4 sm:$0xff]  }
  0x60   : > { %527 = vmatprep.subr.bf16.mxu0 %v1789_v6  ;;  %v1816_v32 = vld [vmem:[#allocation5 + $0xb4] ss:$8 sps:$4 sm:$0xff]   ;;  %v1863_v33 = vld [vmem:[#allocation5 + $0x140] ss:$8 sps:$4 sm:$0xff]   ;;  %v1818_v35 = vld [vmem:[#allocation5 + $0xb0] ss:$8 sps:$4 sm:$0xff]  }
  0x61   : > { %v1864_v34 = vld [vmem:[#allocation5 + $0x134] ss:$8 sps:$4 sm:$0xff]   ;;  %v1819_v36 = vld [vmem:[#allocation5 + $0xa4] ss:$8 sps:$4 sm:$0xff]   ;;  %v1866_v37 = vld [vmem:[#allocation5 + $0x130] ss:$8 sps:$4 sm:$0xff]  }
  0x62   : > { %891 = vmatpush1.bf16.msra.mxu1 %v1857_v25  ;;  %v1867_v38 = vld [vmem:[#allocation5 + $0x124] ss:$8 sps:$4 sm:$0xff]   ;;  %v1821_v39 = vld [vmem:[#allocation5 + $0xa0] ss:$8 sps:$4 sm:$0xff]   ;;  %v1822_v41 = vld [vmem:[#allocation5 + $0x94] ss:$8 sps:$4 sm:$0xff]  }
  0x63   : > { %528 = vmatpush1.bf16.msra.mxu0 %v1791_v7  ;;  %892 = vmatprep.subr.bf16.mxu1 %v1858_v26  ;;  %v1869_v40 = vld [vmem:[#allocation5 + $0x120] ss:$8 sps:$4 sm:$0xff]   ;;  %v1870_v42 = vld [vmem:[#allocation5 + $0x114] ss:$8 sps:$4 sm:$0xff]   ;;  %v1824_v43 = vld [vmem:[#allocation5 + $0x90] ss:$8 sps:$4 sm:$0xff]  }
  0x64   : > { %529 = vmatprep.subr.bf16.mxu0 %v1792_v8  ;;  %v1872_v44 = vld [vmem:[#allocation5 + $0x110] ss:$8 sps:$4 sm:$0xff]   ;;  %v1825_v45 = vld [vmem:[#allocation5 + $0x84] ss:$8 sps:$4 sm:$0xff]   ;;  %v1827_v47 = vld [vmem:[#allocation5 + $0x80] ss:$8 sps:$4 sm:$0xff]  }
  0x65   : > { %v1873_v46 = vld [vmem:[#allocation5 + $0x104] ss:$8 sps:$4 sm:$0xff]   ;;  %v1875_v48 = vld [vmem:[#allocation5 + $0x100] ss:$8 sps:$4 sm:$0xff]   ;;  %v1876_v49 = vld [vmem:[#allocation5 + $0x1f4] ss:$8 sps:$4 sm:$0xff]  }
  0x66   : > { %893 = vmatpush1.bf16.msra.mxu1 %v1860_v29  ;;  %v1828_v50 = vld [vmem:[%s2265_s11] ss:$8 sps:$4 sm:$0xff]   ;;  %v1831_v51 = vld [vmem:[%s2265_s11 + $0x14] ss:$8 sps:$4 sm:$0xff]   ;;  %v1878_v52 = vld [vmem:[#allocation5 + $0x1f0] ss:$8 sps:$4 sm:$0xff]  }
  0x67   : > { %530 = vmatpush1.bf16.msra.mxu0 %v1794_v9  ;;  %894 = vmatprep.subr.bf16.mxu1 %v1861_v30  ;;  %v1879_v53 = vld [vmem:[#allocation5 + $0x1e4] ss:$8 sps:$4 sm:$0xff]   ;;  %v1881_v54 = vld [vmem:[#allocation5 + $0x1e0] ss:$8 sps:$4 sm:$0xff]   ;;  %v1882_v55 = vld [vmem:[#allocation5 + $0x1d4] ss:$8 sps:$4 sm:$0xff]  }
  0x68   : > { %531 = vmatprep.subr.bf16.mxu0 %v1795_v10  ;;  %v1833_v56 = vld [vmem:[%s2265_s11 + $0x10] ss:$8 sps:$4 sm:$0xff]   ;;  %v1834_v57 = vld [vmem:[%s2265_s11 + $0x24] ss:$8 sps:$4 sm:$0xff]   ;;  %v1887_v60 = vld [vmem:[#allocation5 + $0x1c0] ss:$8 sps:$4 sm:$0xff]  }
  0x69   : > { %v1884_v58 = vld [vmem:[#allocation5 + $0x1d0] ss:$8 sps:$4 sm:$0xff]   ;;  %v1885_v59 = vld [vmem:[#allocation5 + $0x1c4] ss:$8 sps:$4 sm:$0xff]   ;;  %v1888_v61 = vld [vmem:[#allocation5 + $0x1b4] ss:$8 sps:$4 sm:$0xff]  }
  0x6a   : > { %895 = vmatpush1.bf16.msra.mxu1 %v1863_v33  ;;  %v1836_v62 = vld [vmem:[%s2265_s11 + $0x20] ss:$8 sps:$4 sm:$0xff]   ;;  %v1837_v63 = vld [vmem:[%s2265_s11 + $0x34] ss:$8 sps:$4 sm:$0xff]   ;;  %v1890_v0 = vld [vmem:[#allocation5 + $0x1b0] ss:$8 sps:$4 sm:$0xff]  }
  0x6b   : > { %532 = vmatpush1.bf16.msra.mxu0 %v1797_v11  ;;  %896 = vmatprep.subr.bf16.mxu1 %v1864_v34  ;;  %v1839_v1 = vld [vmem:[%s2265_s11 + $0x30] ss:$8 sps:$4 sm:$0xff]   ;;  %v1840_v2 = vld [vmem:[%s2265_s11 + $0x44] ss:$8 sps:$4 sm:$0xff]   ;;  %v1842_v3 = vld [vmem:[%s2265_s11 + $0x40] ss:$8 sps:$4 sm:$0xff]  }
  0x6c   : > { %533 = vmatprep.subr.bf16.mxu0 %v1798_v12  ;;  %v1843_v4 = vld [vmem:[%s2265_s11 + $0x54] ss:$8 sps:$4 sm:$0xff]   ;;  %v1845_v5 = vld [vmem:[%s2265_s11 + $0x50] ss:$8 sps:$4 sm:$0xff]   ;;  %v1846_v6 = vld [vmem:[%s2265_s11 + $0x64] ss:$8 sps:$4 sm:$0xff]  }
  0x6d   : > { %v1848_v7 = vld [vmem:[%s2265_s11 + $0x60] ss:$8 sps:$4 sm:$0xff]   ;;  %v1849_v8 = vld [vmem:[%s2265_s11 + $0x74] ss:$8 sps:$4 sm:$0xff]   ;;  %v1851_v9 = vld [vmem:[%s2265_s11 + $0x70] ss:$8 sps:$4 sm:$0xff]  }
  0x6e   : > { %897 = vmatpush1.bf16.msra.mxu1 %v1866_v37  ;;  %v1891_v10 = vld [vmem:[#allocation5 + $0x1a4] ss:$8 sps:$4 sm:$0xff]   ;;  %v1893_v11 = vld [vmem:[#allocation5 + $0x1a0] ss:$8 sps:$4 sm:$0xff]   ;;  %v1894_v12 = vld [vmem:[#allocation5 + $0x194] ss:$8 sps:$4 sm:$0xff]  }
  0x6f   : > { %534 = vmatpush1.bf16.msra.mxu0 %v1800_v14  ;;  %898 = vmatprep.subr.bf16.mxu1 %v1867_v38  ;;  %v1896_v13 = vld [vmem:[#allocation5 + $0x190] ss:$8 sps:$4 sm:$0xff]   ;;  %v1897_v14 = vld [vmem:[#allocation5 + $0x184] ss:$8 sps:$4 sm:$0xff]   ;;  %v2299_v20 = vld [vmem:[#allocation5 + $0x254] ss:$8 sps:$4 sm:$0xff]  }
  0x70   : > { %535 = vmatprep.subr.bf16.mxu0 %v1801_v15  ;;  %v1899_v15 = vld [vmem:[#allocation5 + $0x180] ss:$8 sps:$4 sm:$0xff]   ;;  %v2302_v21 = vld [vmem:[#allocation5 + $0x250] ss:$8 sps:$4 sm:$0xff]   ;;  %v2317_v26 = vld [vmem:[#allocation5 + $0x224] ss:$8 sps:$4 sm:$0xff]  }
  0x71   : > { %v2308_v23 = vld [vmem:[#allocation5 + $0x240] ss:$8 sps:$4 sm:$0xff]   ;;  %v2314_v25 = vld [vmem:[#allocation5 + $0x230] ss:$8 sps:$4 sm:$0xff]   ;;  %v2329_v30 = vld [vmem:[#allocation5 + $0x204] ss:$8 sps:$4 sm:$0xff]  }
  0x72   : > { %899 = vmatpush1.bf16.msra.mxu1 %v1869_v40  ;;  %v2326_v29 = vld [vmem:[#allocation5 + $0x210] ss:$8 sps:$4 sm:$0xff]   ;;  %v2341_v34 = vld [vmem:[#allocation5 + $0x2e4] ss:$8 sps:$4 sm:$0xff]   ;;  %v2359_v40 = vld [vmem:[#allocation5 + $0x2b4] ss:$8 sps:$4 sm:$0xff]  }
  0x73   : > { %536 = vmatpush1.bf16.msra.mxu0 %v1803_v16  ;;  %900 = vmatprep.subr.bf16.mxu1 %v1870_v42  ;;  %v2291_v16 = vld [vmem:[#allocation5 + $0x270] ss:$8 sps:$4 sm:$0xff]   ;;  %v2353_v38 = vld [vmem:[#allocation5 + $0x2c4] ss:$8 sps:$4 sm:$0xff]   ;;  %v271_v42 = vlaneseq  ;;  %s1552_s18 = sshll.u32 %s2261_s7, 8  ;;  %s1674_s27 = sshll.u32 %s2149_s16, 12 }
  0x74   : > { %537 = vmatprep.subr.bf16.mxu0 %v1804_v17  ;;  %v1902_v17 = vld [vmem:[#allocation5 + $0x274] ss:$8 sps:$4 sm:$0xff]   ;;  %v2338_v33 = vld [vmem:[#allocation5 + $0x2f0] ss:$8 sps:$4 sm:$0xff]   ;;  %s2480_s20 = scalar_lea.vmem [#allocation8], %s1552_s18  ;;  %s2547_s5 = scalar_lea.hbm %s2597_s3, %s1674_s27 }
  0x75   : > { %v2350_v37 = vld [vmem:[#allocation5 + $0x2d0] ss:$8 sps:$4 sm:$0xff]   ;;  %s1447_s28 = sshll.u32 %s2480_s20, 4  ;;  %s1433_s16 = scalar_lea.sflag [#allocation4], %s2261_s7  ;;  %s2549_s28 = int_to_ptr.vmem [resolvable:$true] %s1447_s28 }
  0x76   : > { %901 = vmatpush1.bf16.msra.mxu1 %v1872_v44  ;;  %s2028_s6 = scalar_lea.vmem %s2549_s28, 4096  ;;  %p2612_p2 = scmp.ne.s32.totalorder %s2606_s21, 0 }
  0x77   : > { %538 = vmatpush2.bf16.msra.mxu0 %v1806_v18  ;;  %902 = vmatprep.subr.bf16.mxu1 %v1873_v46  ;;  %v2293_v18 = vld [vmem:[#allocation5 + $0x264] ss:$8 sps:$4 sm:$0xff]   ;;  %v269_v46 = vld [vmem:[#allocation7] sm:$0x3]  ;;  %p2029_p10 = scmp.ne.s32.totalorder %s2549_s28, %s2028_s6  ;;  %s2105_s23 = smov [#allocation8]  }
  0x78   : > { %539 = vmatprep.subr.bf16.mxu0 %v1807_v19  ;;  %v2296_v19 = vld [vmem:[#allocation5 + $0x260] ss:$8 sps:$4 sm:$0xff]   ;;  %s2032_s24 = sshll.u32 %s2105_s23, 4  ;;  %s2033_s24 = int_to_ptr.vmem [resolvable:$false] %s2032_s24 }
  0x79   : > { %p2030_p7 = pnand %p2029_p10, %p2612_p2  ;;  %s2034_s22 = scalar_lea.vmem %s2033_s24, 8192 }
  0x7a   : > { %903 = vmatpush1.bf16.msra.mxu1 %v1875_v48  ;;  %p2035_p13 = scmp.lt.s32.totalorder %s2549_s28, %s2033_s24  ;;  %p2036_p0 = scmp.lt.s32.totalorder %s2034_s22, %s2028_s6 }
  0x7b   : > { %540 = vmatpush2.bf16.msra.mxu0 %v1809_v22  ;;  %904 = vmatprep.subr.bf16.mxu1 %v1876_v49  ;;  %v2305_v22 = vld [vmem:[#allocation5 + $0x244] ss:$8 sps:$4 sm:$0xff]   ;;  %p2031_p12 = pneg %p2030_p7 }
  0x7c   : > { %541 = vmatprep.subr.bf16.mxu0 %v1810_v24  ;;  %v2311_v24 = vld [vmem:[#allocation5 + $0x234] ss:$8 sps:$4 sm:$0xff]   ;;  %p2037_p5 = por %p2036_p0, %p2035_p13 }
  0x7e   : > { %905 = vmatpush2.bf16.msra.mxu1 %v1878_v52  ;;  %p2038_p3 = pnand %p2037_p5, %p2031_p12 }
  0x7f   : > { %542 = vmatpush2.bf16.msra.mxu0 %v1812_v27  ;;  %906 = vmatprep.subr.bf16.mxu1 %v1879_v53  ;;  %v2320_v27 = vld [vmem:[#allocation5 + $0x220] ss:$8 sps:$4 sm:$0xff]  }
  0x80   : > { %543 = vmatprep.subr.bf16.mxu0 %v1813_v28  ;;  %v2323_v28 = vld [vmem:[#allocation5 + $0x214] ss:$8 sps:$4 sm:$0xff]  }
  0x82   : > { %907 = vmatpush2.bf16.msra.mxu1 %v1881_v54 }
  0x83   : > { %544 = vmatpush2.bf16.msra.mxu0 %v1815_v31  ;;  %908 = vmatprep.subr.bf16.mxu1 %v1882_v55  ;;  %v2332_v31 = vld [vmem:[#allocation5 + $0x200] ss:$8 sps:$4 sm:$0xff]  }
  0x84   : > { %545 = vmatprep.subr.bf16.mxu0 %v1816_v32  ;;  %v2335_v32 = vld [vmem:[#allocation5 + $0x2f4] ss:$8 sps:$4 sm:$0xff]  }
  0x86   : > { %909 = vmatpush2.bf16.msra.mxu1 %v1884_v58 }
  0x87   : > { %546 = vmatpush2.bf16.msra.mxu0 %v1818_v35  ;;  %910 = vmatprep.subr.bf16.mxu1 %v1885_v59  ;;  %v2344_v35 = vld [vmem:[#allocation5 + $0x2e0] ss:$8 sps:$4 sm:$0xff]  }
  0x88   : > { %547 = vmatprep.subr.bf16.mxu0 %v1819_v36  ;;  %v2347_v36 = vld [vmem:[#allocation5 + $0x2d4] ss:$8 sps:$4 sm:$0xff]  }
  0x8a   : > { %911 = vmatpush2.bf16.msra.mxu1 %v1887_v60 }
  0x8b   : > { %548 = vmatpush2.bf16.msra.mxu0 %v1821_v39  ;;  %912 = vmatprep.subr.bf16.mxu1 %v1888_v61  ;;  %v2356_v39 = vld [vmem:[#allocation5 + $0x2c0] ss:$8 sps:$4 sm:$0xff]  }
  0x8c   : > { %549 = vmatprep.subr.bf16.mxu0 %v1822_v41  ;;  %v2362_v41 = vld [vmem:[#allocation5 + $0x2b0] ss:$8 sps:$4 sm:$0xff]  }
  0x8e   : > { %913 = vmatpush2.bf16.msra.mxu1 %v1890_v0 }
  0x8f   : > { %550 = vmatpush2.bf16.msra.mxu0 %v1824_v43  ;;  %914 = vmatprep.subr.bf16.mxu1 %v1891_v10  ;;  %v272_v43 = vshrl.u32 %v271_v42, 7 }
  0x90   : > { %551 = vmatprep.subr.bf16.mxu0 %v1825_v45 }
  0x91   : > { %v2366_v44 = vsub.s32 1, %v272_v43  ;;  %v2368_v45 = vsub.s32 0, %v272_v43 }
  0x92   : > { %915 = vmatpush2.bf16.msra.mxu1 %v1893_v11 }
  0x93   : > { %552 = vmatpush2.bf16.msra.mxu0 %v1827_v47  ;;  %916 = vmatprep.subr.bf16.mxu1 %v1894_v12  ;;  %v2371_v48 = vrot.slane %v269_v46, %v2366_v44  ;;  %v2374_v49 = vrot.slane %v269_v46, %v2368_v45 }
  0x94   : > { %1255 = vmatprep.subr.bf16.mxu0 %v1902_v17 }
  0x96   : > { %554 = vmatmul.mubr.bf16.vlgmr.msra.gmra.mxu0 %v1828_v50  ;;  %917 = vmatpush2.bf16.msra.mxu1 %v1896_v13 }
  0x97   : > { %563 = vmatprep.mubr.bf16.mxu0 %v1831_v51  ;;  %918 = vmatprep.subr.bf16.mxu1 %v1897_v14 }
  0x98   : > { %1256 = vmatpush1.bf16.msra.mxu0 %v2291_v16 }
  0x99   : > { %1257 = vmatprep.subr.bf16.mxu0 %v2293_v18 }
  0x9a   : > { %919 = vmatpush2.bf16.msra.mxu1 %v1899_v15 }
  0x9b   : > { %1675 = vmatprep.subr.bf16.mxu1 %v1902_v17 }
  0x9c   : > { %1258 = vmatpush1.bf16.msra.mxu0 %v2296_v19 }
  0x9d   : > { %1259 = vmatprep.subr.bf16.mxu0 %v2299_v20 }
  0x9e   : > { %564 = vmatmul.mubr.bf16.gmra.mxu0 %v1833_v56 }
  0x9f   : > { %573 = vmatprep.mubr.bf16.mxu0 %v1834_v57 }
  0xa0   : > { %1260 = vmatpush1.bf16.msra.mxu0 %v2302_v21 }
  0xa1   : > { %1261 = vmatprep.subr.bf16.mxu0 %v2305_v22 }
  0xa4   : > { %1262 = vmatpush1.bf16.msra.mxu0 %v2308_v23 }
  0xa5   : > { %1263 = vmatprep.subr.bf16.mxu0 %v2311_v24 }
  0xa6   : > { %574 = vmatmul.mubr.bf16.gmra.mxu0 %v1836_v62 }
  0xa7   : > { %583 = vmatprep.mubr.bf16.mxu0 %v1837_v63 }
  0xa8   : > { %1264 = vmatpush1.bf16.msra.mxu0 %v2314_v25 }
  0xa9   : > { %1265 = vmatprep.subr.bf16.mxu0 %v2317_v26 }
  0xac   : > { %1266 = vmatpush1.bf16.msra.mxu0 %v2320_v27 }
  0xad   : > { %1267 = vmatprep.subr.bf16.mxu0 %v2323_v28 }
  0xae   : > { %584 = vmatmul.mubr.bf16.gmra.mxu0 %v1839_v1 }
  0xaf   : > { %593 = vmatprep.mubr.bf16.mxu0 %v1840_v2 }
  0xb0   : > { %1268 = vmatpush1.bf16.msra.mxu0 %v2326_v29 }
  0xb1   : > { %1269 = vmatprep.subr.bf16.mxu0 %v2329_v30 }
  0xb4   : > { %1270 = vmatpush1.bf16.msra.mxu0 %v2332_v31 }
  0xb5   : > { %1271 = vmatprep.subr.bf16.mxu0 %v2335_v32 }
  0xb6   : > { %594 = vmatmul.mubr.bf16.gmra.mxu0 %v1842_v3 }
  0xb7   : > { %603 = vmatprep.mubr.bf16.mxu0 %v1843_v4 }
  0xb8   : > { %1272 = vmatpush2.bf16.msra.mxu0 %v2338_v33 }
  0xb9   : > { %1273 = vmatprep.subr.bf16.mxu0 %v2341_v34 }
  0xbc   : > { %1274 = vmatpush2.bf16.msra.mxu0 %v2344_v35 }
  0xbd   : > { %1275 = vmatprep.subr.bf16.mxu0 %v2347_v36 }
  0xbe   : > { %604 = vmatmul.mubr.bf16.gmra.mxu0 %v1845_v5 }
  0xbf   : > { %613 = vmatprep.mubr.bf16.mxu0 %v1846_v6 }
  0xc0   : > { %1276 = vmatpush2.bf16.msra.mxu0 %v2350_v37 }
  0xc1   : > { %1277 = vmatprep.subr.bf16.mxu0 %v2353_v38 }
  0xc4   : > { %1278 = vmatpush2.bf16.msra.mxu0 %v2356_v39 }
  0xc5   : > { %1279 = vmatprep.subr.bf16.mxu0 %v2359_v40 }
  0xc6   : > { %614 = vmatmul.mubr.bf16.gmra.mxu0 %v1848_v7 }
  0xc7   : > { %623 = vmatprep.mubr.bf16.mxu0 %v1849_v8 }
  0xc8   : > { %1280 = vmatpush2.bf16.msra.mxu0 %v2362_v41 }
  0xce   : > { %624 = vmatmul.mubr.bf16.gmra.mxu0 %v1851_v9 }
 0x156   : > { %v555_v47 = vpop.f32.mrf.mxu0 }
 0x157   : > { %v556_v54 = vadd.f32 %v555_v47, %v2374_v49 }
 0x158   : > { %v557_v50 = vpop.f32.mrf.mxu0 }
 0x159   : > { %v558_v52 = vadd.f32 %v557_v50, %v2371_v48  ;;  %v634_v61 = vmax.f32 %v556_v54, 0.0 }
 0x15a   : > { %v559_v51 = vpop.f32.mrf.mxu0 }
 0x15b   : > { %v560_v53 = vadd.f32 %v559_v51, %v2374_v49  ;;  %v635_v59 = vmax.f32 %v558_v52, 0.0 }
 0x15c   : > { %v561_v55 = vpop.f32.mrf.mxu0 }
 0x15d   : > { %v562_v56 = vadd.f32 %v561_v55, %v2371_v48  ;;  %v636_v57 = vmax.f32 %v560_v53, 0.0 }
 0x15e   : > { %v565_v58 = vpop.f32.mrf.mxu0 }
 0x15f   : > { %v637_v60 = vmax.f32 %v562_v56, 0.0  ;;  %v666_v0 = vpack.c.bf16 %v636_v57, %v634_v61  ;;  %v566_v4 = vadd.f32 %v565_v58, %v2374_v49 }
 0x160   : > { %v567_v62 = vpop.f32.mrf.mxu0 }
 0x161   : > { %v667_v63 = vpack.c.bf16 %v637_v60, %v635_v59  ;;  %v568_v2 = vadd.f32 %v567_v62, %v2371_v48  ;;  %v638_v11 = vmax.f32 %v566_v4, 0.0 }
 0x162   : > { %v569_v1 = vpop.f32.mrf.mxu0 }
 0x163   : > { %v570_v3 = vadd.f32 %v569_v1, %v2374_v49  ;;  %920 = vmatprep.mubr.bf16.mxu1 %v667_v63  ;;  %v639_v9 = vmax.f32 %v568_v2, 0.0 }
 0x164   : > { %v571_v5 = vpop.f32.mrf.mxu0  ;;  %921 = vmatmul.mubr.bf16.vlgmr.msra.gmra.mxu1 %v666_v0 }
 0x165   : > { %v572_v6 = vadd.f32 %v571_v5, %v2371_v48  ;;  %1691 = vmatpush1.bf16.msra.mxu1 %v2291_v16  ;;  %v640_v7 = vmax.f32 %v570_v3, 0.0 }
 0x166   : > { %v575_v8 = vpop.f32.mrf.mxu0  ;;  %1676 = vmatprep.subr.bf16.mxu1 %v2293_v18 }
 0x167   : > { %v641_v10 = vmax.f32 %v572_v6, 0.0  ;;  %v668_v14 = vpack.c.bf16 %v640_v7, %v638_v11  ;;  %v576_v16 = vadd.f32 %v575_v8, %v2374_v49 }
 0x168   : > { %v577_v12 = vpop.f32.mrf.mxu0 }
 0x169   : > { %v669_v13 = vpack.c.bf16 %v641_v10, %v639_v9  ;;  %1692 = vmatpush1.bf16.msra.mxu1 %v2296_v19  ;;  %v578_v17 = vadd.f32 %v577_v12, %v2371_v48 }
 0x16a   : > { %v579_v15 = vpop.f32.mrf.mxu0  ;;  %1677 = vmatprep.subr.bf16.mxu1 %v2299_v20  ;;  %v642_v20 = vmax.f32 %v576_v16, 0.0 }
 0x16b   : > { %v580_v42 = vadd.f32 %v579_v15, %v2374_v49  ;;  %930 = vmatprep.mubr.bf16.mxu1 %v669_v13  ;;  %v643_v19 = vmax.f32 %v578_v17, 0.0 }
 0x16c   : > { %v581_v43 = vpop.f32.mrf.mxu0  ;;  %931 = vmatmul.mubr.bf16.gmra.mxu1 %v668_v14 }
 0x16d   : > { %v582_v18 = vadd.f32 %v581_v43, %v2371_v48  ;;  %1693 = vmatpush1.bf16.msra.mxu1 %v2302_v21  ;;  %v644_v46 = vmax.f32 %v580_v42, 0.0 }
 0x16e   : > { %v585_v47 = vpop.f32.mrf.mxu0  ;;  %1678 = vmatprep.subr.bf16.mxu1 %v2305_v22 }
 0x16f   : > { %v645_v50 = vmax.f32 %v582_v18, 0.0  ;;  %v670_v53 = vpack.c.bf16 %v644_v46, %v642_v20  ;;  %v586_v21 = vadd.f32 %v585_v47, %v2374_v49 }
 0x170   : > { %v587_v51 = vpop.f32.mrf.mxu0 }
 0x171   : > { %v671_v52 = vpack.c.bf16 %v645_v50, %v643_v19  ;;  %1694 = vmatpush1.bf16.msra.mxu1 %v2308_v23  ;;  %v588_v55 = vadd.f32 %v587_v51, %v2371_v48 }
 0x172   : > { %v589_v54 = vpop.f32.mrf.mxu0  ;;  %1679 = vmatprep.subr.bf16.mxu1 %v2311_v24  ;;  %v646_v24 = vmax.f32 %v586_v21, 0.0 }
 0x173   : > { %v590_v56 = vadd.f32 %v589_v54, %v2374_v49  ;;  %940 = vmatprep.mubr.bf16.mxu1 %v671_v52  ;;  %v647_v23 = vmax.f32 %v588_v55, 0.0 }
 0x174   : > { %v591_v57 = vpop.f32.mrf.mxu0  ;;  %941 = vmatmul.mubr.bf16.gmra.mxu1 %v670_v53 }
 0x175   : > { %v592_v22 = vadd.f32 %v591_v57, %v2371_v48  ;;  %1695 = vmatpush1.bf16.msra.mxu1 %v2314_v25  ;;  %v648_v58 = vmax.f32 %v590_v56, 0.0 }
 0x176   : > { %v595_v59 = vpop.f32.mrf.mxu0  ;;  %1680 = vmatprep.subr.bf16.mxu1 %v2317_v26 }
 0x177   : > { %v649_v60 = vmax.f32 %v592_v22, 0.0  ;;  %v672_v63 = vpack.c.bf16 %v648_v58, %v646_v24  ;;  %v596_v25 = vadd.f32 %v595_v59, %v2374_v49  ;;  %v1939_v24 = vld [vmem:[#allocation5 + $0x2a0] ss:$8 sps:$4 sm:$0xff]  }
 0x178   : > { %v597_v61 = vpop.f32.mrf.mxu0 }
 0x179   : > { %v673_v62 = vpack.c.bf16 %v649_v60, %v647_v23  ;;  %1696 = vmatpush1.bf16.msra.mxu1 %v2320_v27  ;;  %v598_v1 = vadd.f32 %v597_v61, %v2371_v48  ;;  %v1942_v61 = vld [vmem:[#allocation5 + $0x290] ss:$8 sps:$4 sm:$0xff]  }
 0x17a   : > { %v599_v0 = vpop.f32.mrf.mxu0  ;;  %1681 = vmatprep.subr.bf16.mxu1 %v2323_v28  ;;  %v650_v28 = vmax.f32 %v596_v25, 0.0 }
 0x17b   : > { %v600_v2 = vadd.f32 %v599_v0, %v2374_v49  ;;  %950 = vmatprep.mubr.bf16.mxu1 %v673_v62  ;;  %v651_v27 = vmax.f32 %v598_v1, 0.0  ;;  %v716_v62 = vld [vmem:[#allocation7 + $0x2] sm:$0x3] }
 0x17c   : > { %v601_v3 = vpop.f32.mrf.mxu0  ;;  %951 = vmatmul.mubr.bf16.gmra.mxu1 %v672_v63  ;;  %v2434_v0 = vrot.slane %v716_v62, %v2366_v44  ;;  %v2437_v1 = vrot.slane %v716_v62, %v2368_v45 }
 0x17d   : > { %v602_v26 = vadd.f32 %v601_v3, %v2371_v48  ;;  %1697 = vmatpush1.bf16.msra.mxu1 %v2326_v29  ;;  %v652_v4 = vmax.f32 %v600_v2, 0.0 }
 0x17e   : > { %v605_v5 = vpop.f32.mrf.mxu0  ;;  %1682 = vmatprep.subr.bf16.mxu1 %v2329_v30 }
 0x17f   : > { %v653_v6 = vmax.f32 %v602_v26, 0.0  ;;  %v674_v9 = vpack.c.bf16 %v652_v4, %v650_v28  ;;  %v606_v29 = vadd.f32 %v605_v5, %v2374_v49 }
 0x180   : > { %v607_v7 = vpop.f32.mrf.mxu0 }
 0x181   : > { %v675_v8 = vpack.c.bf16 %v653_v6, %v651_v27  ;;  %1698 = vmatpush1.bf16.msra.mxu1 %v2332_v31  ;;  %v608_v11 = vadd.f32 %v607_v7, %v2371_v48 }
 0x182   : > { %v609_v10 = vpop.f32.mrf.mxu0  ;;  %1683 = vmatprep.subr.bf16.mxu1 %v2335_v32  ;;  %v654_v32 = vmax.f32 %v606_v29, 0.0 }
 0x183   : > { %v610_v12 = vadd.f32 %v609_v10, %v2374_v49  ;;  %960 = vmatprep.mubr.bf16.mxu1 %v675_v8  ;;  %v655_v31 = vmax.f32 %v608_v11, 0.0 }
 0x184   : > { %v611_v13 = vpop.f32.mrf.mxu0  ;;  %961 = vmatmul.mubr.bf16.gmra.mxu1 %v674_v9 }
 0x185   : > { %v612_v30 = vadd.f32 %v611_v13, %v2371_v48  ;;  %1699 = vmatpush2.bf16.msra.mxu1 %v2338_v33  ;;  %v656_v14 = vmax.f32 %v610_v12, 0.0 }
 0x186   : > { %v615_v15 = vpop.f32.mrf.mxu0  ;;  %1684 = vmatprep.subr.bf16.mxu1 %v2341_v34 }
 0x187   : > { %v657_v17 = vmax.f32 %v612_v30, 0.0  ;;  %v676_v43 = vpack.c.bf16 %v656_v14, %v654_v32  ;;  %v616_v33 = vadd.f32 %v615_v15, %v2374_v49 }
 0x188   : > { %v617_v42 = vpop.f32.mrf.mxu0 }
 0x189   : > { %v677_v16 = vpack.c.bf16 %v657_v17, %v655_v31  ;;  %1700 = vmatpush2.bf16.msra.mxu1 %v2344_v35  ;;  %v618_v46 = vadd.f32 %v617_v42, %v2371_v48 }
 0x18a   : > { %v619_v18 = vpop.f32.mrf.mxu0  ;;  %1685 = vmatprep.subr.bf16.mxu1 %v2347_v36  ;;  %v658_v36 = vmax.f32 %v616_v33, 0.0 }
 0x18b   : > { %v620_v47 = vadd.f32 %v619_v18, %v2374_v49  ;;  %970 = vmatprep.mubr.bf16.mxu1 %v677_v16  ;;  %v659_v35 = vmax.f32 %v618_v46, 0.0 }
 0x18c   : > { %v621_v19 = vpop.f32.mrf.mxu0  ;;  %971 = vmatmul.mubr.bf16.gmra.mxu1 %v676_v43 }
 0x18d   : > { %v622_v34 = vadd.f32 %v621_v19, %v2371_v48  ;;  %1701 = vmatpush2.bf16.msra.mxu1 %v2350_v37  ;;  %v660_v50 = vmax.f32 %v620_v47, 0.0 }
 0x18e   : > { %v625_v20 = vpop.f32.mrf.mxu0  ;;  %1686 = vmatprep.subr.bf16.mxu1 %v2353_v38 }
 0x18f   : > { %v661_v51 = vmax.f32 %v622_v34, 0.0  ;;  %v678_v54 = vpack.c.bf16 %v660_v50, %v658_v36  ;;  %v626_v37 = vadd.f32 %v625_v20, %v2374_v49 }
 0x190   : > { %v627_v52 = vpop.f32.mrf.mxu0 }
 0x191   : > { %v679_v53 = vpack.c.bf16 %v661_v51, %v659_v35  ;;  %1702 = vmatpush2.bf16.msra.mxu1 %v2356_v39  ;;  %v628_v56 = vadd.f32 %v627_v52, %v2371_v48  ;;  %v662_v59 = vmax.f32 %v626_v37, 0.0 }
 0x192   : > { %v629_v55 = vpop.f32.mrf.mxu0  ;;  %1687 = vmatprep.subr.bf16.mxu1 %v2359_v40  ;;  %v1941_v40 = vld [vmem:[#allocation5 + $0x2a4] ss:$8 sps:$4 sm:$0xff]  }
 0x193   : > { %v630_v21 = vadd.f32 %v629_v55, %v2374_v49  ;;  %980 = vmatprep.mubr.bf16.mxu1 %v679_v53  ;;  %v663_v58 = vmax.f32 %v628_v56, 0.0  ;;  %1281 = vmatprep.subr.bf16.mxu0 %v1941_v40  ;;  %v1944_v49 = vld [vmem:[#allocation5 + $0x294] ss:$8 sps:$4 sm:$0xff]  }
 0x194   : > { %v631_v57 = vpop.f32.mrf.mxu0  ;;  %981 = vmatmul.mubr.bf16.gmra.mxu1 %v678_v54  ;;  %1282 = vmatpush2.bf16.msra.mxu0 %v1939_v24 }
 0x195   : > { %v632_v38 = vadd.f32 %v631_v57, %v2371_v48  ;;  %1703 = vmatpush2.bf16.msra.mxu1 %v2362_v41  ;;  %v664_v22 = vmax.f32 %v630_v21, 0.0  ;;  %1283 = vmatprep.subr.bf16.mxu0 %v1944_v49  ;;  %v1947_v41 = vld [vmem:[#allocation5 + $0x284] ss:$8 sps:$4 sm:$0xff]   ;;  %v1945_v48 = vld [vmem:[#allocation5 + $0x280] ss:$8 sps:$4 sm:$0xff]  }
 0x196   : > { %1688 = vmatprep.subr.bf16.mxu1 %v1941_v40 }
 0x197   : > { %v665_v39 = vmax.f32 %v632_v38, 0.0  ;;  %v680_v60 = vpack.c.bf16 %v664_v22, %v662_v59 }
 0x198   : > { %1284 = vmatpush2.bf16.msra.mxu0 %v1942_v61 }
 0x199   : > { %v681_v23 = vpack.c.bf16 %v665_v39, %v663_v58  ;;  %1704 = vmatpush2.bf16.msra.mxu1 %v1939_v24  ;;  %1285 = vmatprep.subr.bf16.mxu0 %v1947_v41 }
 0x19a   : > { %1689 = vmatprep.subr.bf16.mxu1 %v1944_v49 }
 0x19b   : > { %990 = vmatprep.mubr.bf16.mxu1 %v681_v23 }
 0x19c   : > { %991 = vmatmul.mubr.bf16.gmra.mxu1 %v680_v60  ;;  %1286 = vmatpush2.bf16.msra.mxu0 %v1945_v48 }
 0x19d   : > { %1705 = vmatpush2.bf16.msra.mxu1 %v1942_v61 }
 0x19e   : > { %1690 = vmatprep.subr.bf16.mxu1 %v1947_v41 }
 0x1a1   : > { %1706 = vmatpush2.bf16.msra.mxu1 %v1945_v48 }
 0x224   : > { %v922_v63 = vpop.f32.mrf.mxu1 }
 0x225   : > { %v923_v4 = vadd.f32 %v922_v63, %v2437_v1 }
 0x226   : > { %v924_v2 = vpop.f32.mrf.mxu1 }
 0x227   : > { %v925_v3 = vadd.f32 %v924_v2, %v2434_v0  ;;  %v1001_v9 = vmax.f32 %v923_v4, 0.0 }
 0x228   : > { %v926_v25 = vpop.f32.mrf.mxu1 }
 0x229   : > { %v927_v26 = vadd.f32 %v926_v25, %v2437_v1  ;;  %v1002_v7 = vmax.f32 %v925_v3, 0.0 }
 0x22a   : > { %v928_v5 = vpop.f32.mrf.mxu1 }
 0x22b   : > { %v929_v27 = vadd.f32 %v928_v5, %v2434_v0  ;;  %v1003_v6 = vmax.f32 %v927_v26, 0.0 }
 0x22c   : > { %v932_v28 = vpop.f32.mrf.mxu1 }
 0x22d   : > { %v1004_v8 = vmax.f32 %v929_v27, 0.0  ;;  %v1033_v12 = vpack.c.bf16 %v1003_v6, %v1001_v9  ;;  %v933_v14 = vadd.f32 %v932_v28, %v2437_v1 }
 0x22e   : > { %v934_v10 = vpop.f32.mrf.mxu1 }
 0x22f   : > { %v1034_v11 = vpack.c.bf16 %v1004_v8, %v1002_v7  ;;  %v935_v13 = vadd.f32 %v934_v10, %v2434_v0  ;;  %v1005_v43 = vmax.f32 %v933_v14, 0.0 }
 0x230   : > { %v936_v29 = vpop.f32.mrf.mxu1 }
 0x231   : > { %v937_v30 = vadd.f32 %v936_v29, %v2437_v1  ;;  %1287 = vmatprep.mubr.bf16.mxu0 %v1034_v11  ;;  %v1006_v42 = vmax.f32 %v935_v13, 0.0 }
 0x232   : > { %v938_v15 = vpop.f32.mrf.mxu1  ;;  %1288 = vmatmul.mubr.bf16.vlgmr.msra.gmra.mxu0 %v1033_v12 }
 0x233   : > { %v939_v31 = vadd.f32 %v938_v15, %v2434_v0  ;;  %v1007_v17 = vmax.f32 %v937_v30, 0.0 }
 0x234   : > { %v942_v32 = vpop.f32.mrf.mxu1 }
 0x235   : > { %v1008_v16 = vmax.f32 %v939_v31, 0.0  ;;  %v1035_v47 = vpack.c.bf16 %v1007_v17, %v1005_v43  ;;  %v943_v50 = vadd.f32 %v942_v32, %v2437_v1 }
 0x236   : > { %v944_v18 = vpop.f32.mrf.mxu1 }
 0x237   : > { %v1036_v46 = vpack.c.bf16 %v1008_v16, %v1006_v42  ;;  %v945_v19 = vadd.f32 %v944_v18, %v2434_v0  ;;  %v1009_v54 = vmax.f32 %v943_v50, 0.0 }
 0x238   : > { %v946_v33 = vpop.f32.mrf.mxu1 }
 0x239   : > { %v947_v34 = vadd.f32 %v946_v33, %v2437_v1  ;;  %1297 = vmatprep.mubr.bf16.mxu0 %v1036_v46  ;;  %v1010_v52 = vmax.f32 %v945_v19, 0.0 }
 0x23a   : > { %v948_v20 = vpop.f32.mrf.mxu1  ;;  %1298 = vmatmul.mubr.bf16.gmra.mxu0 %v1035_v47 }
 0x23b   : > { %v949_v35 = vadd.f32 %v948_v20, %v2434_v0  ;;  %v1011_v51 = vmax.f32 %v947_v34, 0.0 }
 0x23c   : > { %v952_v36 = vpop.f32.mrf.mxu1 }
 0x23d   : > { %v1012_v53 = vmax.f32 %v949_v35, 0.0  ;;  %v1037_v21 = vpack.c.bf16 %v1011_v51, %v1009_v54  ;;  %v953_v22 = vadd.f32 %v952_v36, %v2437_v1 }
 0x23e   : > { %v954_v55 = vpop.f32.mrf.mxu1 }
 0x23f   : > { %v1038_v56 = vpack.c.bf16 %v1012_v53, %v1010_v52  ;;  %v955_v57 = vadd.f32 %v954_v55, %v2434_v0  ;;  %v1013_v24 = vmax.f32 %v953_v22, 0.0 }
 0x240   : > { %v956_v37 = vpop.f32.mrf.mxu1 }
 0x241   : > { %v957_v38 = vadd.f32 %v956_v37, %v2437_v1  ;;  %1307 = vmatprep.mubr.bf16.mxu0 %v1038_v56  ;;  %v1014_v60 = vmax.f32 %v955_v57, 0.0 }
 0x242   : > { %v958_v58 = vpop.f32.mrf.mxu1  ;;  %1308 = vmatmul.mubr.bf16.gmra.mxu0 %v1037_v21 }
 0x243   : > { %v959_v39 = vadd.f32 %v958_v58, %v2434_v0  ;;  %v1015_v59 = vmax.f32 %v957_v38, 0.0 }
 0x244   : > { %v962_v23 = vpop.f32.mrf.mxu1 }
 0x245   : > { %v1016_v40 = vmax.f32 %v959_v39, 0.0  ;;  %v1039_v41 = vpack.c.bf16 %v1015_v59, %v1013_v24  ;;  %v963_v2 = vadd.f32 %v962_v23, %v2437_v1 }
 0x246   : > { %v964_v49 = vpop.f32.mrf.mxu1 }
 0x247   : > { %v1040_v61 = vpack.c.bf16 %v1016_v40, %v1014_v60  ;;  %v965_v62 = vadd.f32 %v964_v49, %v2434_v0  ;;  %v1017_v6 = vmax.f32 %v963_v2, 0.0  ;;  %v1083_v60 = vld [vmem:[#allocation7 + $0x4] sm:$0x3] }
 0x248   : > { %v966_v48 = vpop.f32.mrf.mxu1  ;;  %v2472_v40 = vrot.slane %v1083_v60, %v2368_v45  ;;  %v2476_v24 = vrot.slane %v1083_v60, %v2366_v44 }
 0x249   : > { %v967_v63 = vadd.f32 %v966_v48, %v2437_v1  ;;  %1317 = vmatprep.mubr.bf16.mxu0 %v1040_v61  ;;  %v1018_v5 = vmax.f32 %v965_v62, 0.0 }
 0x24a   : > { %v968_v25 = vpop.f32.mrf.mxu1  ;;  %1318 = vmatmul.mubr.bf16.gmra.mxu0 %v1039_v41 }
 0x24b   : > { %v969_v3 = vadd.f32 %v968_v25, %v2434_v0  ;;  %v1019_v26 = vmax.f32 %v967_v63, 0.0 }
 0x24c   : > { %v972_v4 = vpop.f32.mrf.mxu1 }
 0x24d   : > { %v1020_v27 = vmax.f32 %v969_v3, 0.0  ;;  %v1041_v8 = vpack.c.bf16 %v1019_v26, %v1017_v6  ;;  %v973_v12 = vadd.f32 %v972_v4, %v2437_v1 }
 0x24e   : > { %v974_v28 = vpop.f32.mrf.mxu1 }
 0x24f   : > { %v1042_v7 = vpack.c.bf16 %v1020_v27, %v1018_v5  ;;  %v975_v10 = vadd.f32 %v974_v28, %v2434_v0  ;;  %v1021_v17 = vmax.f32 %v973_v12, 0.0 }
 0x250   : > { %v976_v9 = vpop.f32.mrf.mxu1 }
 0x251   : > { %v977_v11 = vadd.f32 %v976_v9, %v2437_v1  ;;  %1327 = vmatprep.mubr.bf16.mxu1 %v1042_v7  ;;  %v1022_v15 = vmax.f32 %v975_v10, 0.0 }
 0x252   : > { %v978_v29 = vpop.f32.mrf.mxu1  ;;  %1328 = vmatmul.mubr.bf16.vlgmr.msra.gmra.mxu1 %v1041_v8 }
 0x253   : > { %v979_v13 = vadd.f32 %v978_v29, %v2434_v0  ;;  %v1023_v30 = vmax.f32 %v977_v11, 0.0 }
 0x254   : > { %v982_v14 = vpop.f32.mrf.mxu1 }
 0x255   : > { %v1024_v31 = vmax.f32 %v979_v13, 0.0  ;;  %v1043_v16 = vpack.c.bf16 %v1023_v30, %v1021_v17  ;;  %v983_v47 = vadd.f32 %v982_v14, %v2437_v1 }
 0x256   : > { %v984_v32 = vpop.f32.mrf.mxu1 }
 0x257   : > { %v1044_v42 = vpack.c.bf16 %v1024_v31, %v1022_v15  ;;  %v985_v18 = vadd.f32 %v984_v32, %v2434_v0  ;;  %v1025_v51 = vmax.f32 %v983_v47, 0.0 }
 0x258   : > { %v986_v43 = vpop.f32.mrf.mxu1 }
 0x259   : > { %v987_v46 = vadd.f32 %v986_v43, %v2437_v1  ;;  %1337 = vmatprep.mubr.bf16.mxu1 %v1044_v42  ;;  %v1026_v20 = vmax.f32 %v985_v18, 0.0 }
 0x25a   : > { %v988_v33 = vpop.f32.mrf.mxu1  ;;  %1338 = vmatmul.mubr.bf16.gmra.mxu1 %v1043_v16 }
 0x25b   : > { %v989_v19 = vadd.f32 %v988_v33, %v2434_v0  ;;  %v1027_v34 = vmax.f32 %v987_v46, 0.0 }
 0x25c   : > { %v992_v50 = vpop.f32.mrf.mxu1 }
 0x25d   : > { %v1028_v35 = vmax.f32 %v989_v19, 0.0  ;;  %v1045_v53 = vpack.c.bf16 %v1027_v34, %v1025_v51  ;;  %v993_v21 = vadd.f32 %v992_v50, %v2437_v1 }
 0x25e   : > { %v994_v36 = vpop.f32.mrf.mxu1 }
 0x25f   : > { %v1046_v52 = vpack.c.bf16 %v1028_v35, %v1026_v20  ;;  %v995_v55 = vadd.f32 %v994_v36, %v2434_v0  ;;  %v1029_v39 = vmax.f32 %v993_v21, 0.0 }
 0x260   : > { %v996_v54 = vpop.f32.mrf.mxu1 }
 0x261   : > { %v997_v56 = vadd.f32 %v996_v54, %v2437_v1  ;;  %1347 = vmatprep.mubr.bf16.mxu1 %v1046_v52  ;;  %v1030_v22 = vmax.f32 %v995_v55, 0.0 }
 0x262   : > { %v998_v37 = vpop.f32.mrf.mxu1  ;;  %1348 = vmatmul.mubr.bf16.gmra.mxu1 %v1045_v53 }
 0x263   : > { %v999_v57 = vadd.f32 %v998_v37, %v2434_v0  ;;  %v1031_v38 = vmax.f32 %v997_v56, 0.0 }
 0x265   : > { %v1032_v58 = vmax.f32 %v999_v57, 0.0  ;;  %v1047_v23 = vpack.c.bf16 %v1031_v38, %v1029_v39 }
 0x267   : > { %v1048_v59 = vpack.c.bf16 %v1032_v58, %v1030_v22 }
 0x269   : > { %1357 = vmatprep.mubr.bf16.mxu1 %v1048_v59 }
 0x26a   : > { %1358 = vmatmul.mubr.bf16.gmra.mxu1 %v1047_v23 }
 0x2f2   : > { %v1289_v1 = vpop.f32.mrf.mxu0 }
 0x2f3   : > { %v1290_v49 = vadd.f32 %v1289_v1, %v2472_v40 }
 0x2f4   : > { %v1291_v0 = vpop.f32.mrf.mxu0 }
 0x2f5   : > { %v1368_v61 = vmax.f32 %v1290_v49, 0.0  ;;  %v1292_v41 = vadd.f32 %v1291_v0, %v2476_v24 }
 0x2f6   : > { %v1293_v48 = vpop.f32.mrf.mxu0 }
 0x2f7   : > { %1400 = vst [vmem:[%s2480_s20] sm:$0xff] %v1368_v61  ;;  %v1369_v45 = vmax.f32 %v1292_v41, 0.0  ;;  %v1294_v44 = vadd.f32 %v1293_v48, %v2472_v40 }
 0x2f8   : > { %v1295_v62 = vpop.f32.mrf.mxu0 }
 0x2f9   : > { %1401 = vst [vmem:[%s2480_s20 + $0x8] sm:$0xff] %v1369_v45  ;;  %v1370_v63 = vmax.f32 %v1294_v44, 0.0  ;;  %v1296_v2 = vadd.f32 %v1295_v62, %v2476_v24 }
 0x2fa   : > { %v1299_v25 = vpop.f32.mrf.mxu0 }
 0x2fb   : > { %1402 = vst [vmem:[%s2480_s20 + $0x10] sm:$0xff] %v1370_v63  ;;  %v1371_v3 = vmax.f32 %v1296_v2, 0.0  ;;  %v1300_v26 = vadd.f32 %v1299_v25, %v2472_v40 }
 0x2fc   : > { %v1301_v4 = vpop.f32.mrf.mxu0 }
 0x2fd   : > { %1403 = vst [vmem:[%s2480_s20 + $0x18] sm:$0xff] %v1371_v3  ;;  %v1372_v5 = vmax.f32 %v1300_v26, 0.0  ;;  %v1302_v27 = vadd.f32 %v1301_v4, %v2476_v24 }
 0x2fe   : > { %v1303_v6 = vpop.f32.mrf.mxu0 }
 0x2ff   : > { %1404 = vst [vmem:[%s2480_s20 + $0x20] sm:$0xff] %v1372_v5  ;;  %v1373_v28 = vmax.f32 %v1302_v27, 0.0  ;;  %v1304_v7 = vadd.f32 %v1303_v6, %v2472_v40 }
 0x300   : > { %v1305_v8 = vpop.f32.mrf.mxu0 }
 0x301   : > { %1405 = vst [vmem:[%s2480_s20 + $0x28] sm:$0xff] %v1373_v28  ;;  %v1374_v9 = vmax.f32 %v1304_v7, 0.0  ;;  %v1306_v10 = vadd.f32 %v1305_v8, %v2476_v24 }
 0x302   : > { %v1309_v11 = vpop.f32.mrf.mxu0 }
 0x303   : > { %1406 = vst [vmem:[%s2480_s20 + $0x30] sm:$0xff] %v1374_v9  ;;  %v1375_v12 = vmax.f32 %v1306_v10, 0.0  ;;  %v1310_v29 = vadd.f32 %v1309_v11, %v2472_v40 }
 0x304   : > { %v1311_v13 = vpop.f32.mrf.mxu0 }
 0x305   : > { %1407 = vst [vmem:[%s2480_s20 + $0x38] sm:$0xff] %v1375_v12  ;;  %v1376_v30 = vmax.f32 %v1310_v29, 0.0  ;;  %v1312_v14 = vadd.f32 %v1311_v13, %v2476_v24 }
 0x306   : > { %v1313_v15 = vpop.f32.mrf.mxu0 }
 0x307   : > { %1408 = vst [vmem:[%s2480_s20 + $0x40] sm:$0xff] %v1376_v30  ;;  %v1377_v31 = vmax.f32 %v1312_v14, 0.0  ;;  %v1314_v17 = vadd.f32 %v1313_v15, %v2472_v40 }
 0x308   : > { %v1315_v32 = vpop.f32.mrf.mxu0 }
 0x309   : > { %1409 = vst [vmem:[%s2480_s20 + $0x48] sm:$0xff] %v1377_v31  ;;  %v1378_v42 = vmax.f32 %v1314_v17, 0.0  ;;  %v1316_v16 = vadd.f32 %v1315_v32, %v2476_v24 }
 0x30a   : > { %v1319_v43 = vpop.f32.mrf.mxu0 }
 0x30b   : > { %1410 = vst [vmem:[%s2480_s20 + $0x50] sm:$0xff] %v1378_v42  ;;  %v1379_v18 = vmax.f32 %v1316_v16, 0.0  ;;  %v1320_v46 = vadd.f32 %v1319_v43, %v2472_v40 }
 0x30c   : > { %v1321_v47 = vpop.f32.mrf.mxu0 }
 0x30d   : > { %1411 = vst [vmem:[%s2480_s20 + $0x58] sm:$0xff] %v1379_v18  ;;  %v1380_v33 = vmax.f32 %v1320_v46, 0.0  ;;  %v1322_v19 = vadd.f32 %v1321_v47, %v2476_v24 }
 0x30e   : > { %v1323_v34 = vpop.f32.mrf.mxu0 }
 0x30f   : > { %1412 = vst [vmem:[%s2480_s20 + $0x60] sm:$0xff] %v1380_v33  ;;  %v1381_v50 = vmax.f32 %v1322_v19, 0.0  ;;  %v1324_v20 = vadd.f32 %v1323_v34, %v2472_v40 }
 0x310   : > { %v1325_v35 = vpop.f32.mrf.mxu0 }
 0x311   : > { %1413 = vst [vmem:[%s2480_s20 + $0x68] sm:$0xff] %v1381_v50  ;;  %v1382_v51 = vmax.f32 %v1324_v20, 0.0  ;;  %v1326_v36 = vadd.f32 %v1325_v35, %v2476_v24 }
 0x312   : > { %v1329_v52 = vpop.f32.mrf.mxu1 }
 0x313   : > { %1414 = vst [vmem:[%s2480_s20 + $0x70] sm:$0xff] %v1382_v51  ;;  %v1383_v53 = vmax.f32 %v1326_v36, 0.0  ;;  %v1330_v54 = vadd.f32 %v1329_v52, %v2472_v40 }
 0x314   : > { %v1331_v55 = vpop.f32.mrf.mxu1 }
 0x315   : > { %1415 = vst [vmem:[%s2480_s20 + $0x78] sm:$0xff] %v1383_v53  ;;  %v1384_v56 = vmax.f32 %v1330_v54, 0.0  ;;  %v1332_v21 = vadd.f32 %v1331_v55, %v2476_v24 }
 0x316   : > { %v1333_v37 = vpop.f32.mrf.mxu1 }
 0x317   : > { %1416 = vst [vmem:[%s2480_s20 + $0x80] sm:$0xff] %v1384_v56  ;;  %v1385_v57 = vmax.f32 %v1332_v21, 0.0  ;;  %v1334_v38 = vadd.f32 %v1333_v37, %v2472_v40 }
 0x318   : > { %v1335_v22 = vpop.f32.mrf.mxu1 }
 0x319   : > { %1417 = vst [vmem:[%s2480_s20 + $0x88] sm:$0xff] %v1385_v57  ;;  %v1386_v58 = vmax.f32 %v1334_v38, 0.0  ;;  %v1336_v39 = vadd.f32 %v1335_v22, %v2476_v24 }
 0x31a   : > { %v1339_v59 = vpop.f32.mrf.mxu1 }
 0x31b   : > { %1418 = vst [vmem:[%s2480_s20 + $0x90] sm:$0xff] %v1386_v58  ;;  %v1387_v23 = vmax.f32 %v1336_v39, 0.0  ;;  %v1340_v60 = vadd.f32 %v1339_v59, %v2472_v40 }
 0x31c   : > { %v1341_v1 = vpop.f32.mrf.mxu1 }
 0x31d   : > { %1419 = vst [vmem:[%s2480_s20 + $0x98] sm:$0xff] %v1387_v23  ;;  %v1388_v49 = vmax.f32 %v1340_v60, 0.0  ;;  %v1342_v0 = vadd.f32 %v1341_v1, %v2476_v24 }
 0x31e   : > { %v1343_v61 = vpop.f32.mrf.mxu1 }
 0x31f   : > { %1420 = vst [vmem:[%s2480_s20 + $0xa0] sm:$0xff] %v1388_v49  ;;  %v1389_v41 = vmax.f32 %v1342_v0, 0.0  ;;  %v1344_v48 = vadd.f32 %v1343_v61, %v2472_v40 }
 0x320   : > { %v1345_v45 = vpop.f32.mrf.mxu1 }
 0x321   : > { %1421 = vst [vmem:[%s2480_s20 + $0xa8] sm:$0xff] %v1389_v41  ;;  %v1390_v44 = vmax.f32 %v1344_v48, 0.0  ;;  %v1346_v62 = vadd.f32 %v1345_v45, %v2476_v24 }
 0x322   : > { %v1349_v63 = vpop.f32.mrf.mxu1 }
 0x323   : > { %1422 = vst [vmem:[%s2480_s20 + $0xb0] sm:$0xff] %v1390_v44  ;;  %v1391_v2 = vmax.f32 %v1346_v62, 0.0  ;;  %v1350_v25 = vadd.f32 %v1349_v63, %v2472_v40 }
 0x324   : > { %v1351_v3 = vpop.f32.mrf.mxu1 }
 0x325   : > { %1423 = vst [vmem:[%s2480_s20 + $0xb8] sm:$0xff] %v1391_v2  ;;  %v1392_v26 = vmax.f32 %v1350_v25, 0.0  ;;  %v1352_v4 = vadd.f32 %v1351_v3, %v2476_v24 }
 0x326   : > { %v1353_v5 = vpop.f32.mrf.mxu1 }
 0x327   : > { %1424 = vst [vmem:[%s2480_s20 + $0xc0] sm:$0xff] %v1392_v26  ;;  %v1393_v27 = vmax.f32 %v1352_v4, 0.0  ;;  %v1354_v6 = vadd.f32 %v1353_v5, %v2472_v40 }
 0x328   : > { %v1355_v28 = vpop.f32.mrf.mxu1 }
 0x329   : > { %1425 = vst [vmem:[%s2480_s20 + $0xc8] sm:$0xff] %v1393_v27  ;;  %v1394_v7 = vmax.f32 %v1354_v6, 0.0  ;;  %v1356_v8 = vadd.f32 %v1355_v28, %v2476_v24 }
 0x32a   : > { %v1359_v9 = vpop.f32.mrf.mxu1 }
 0x32b   : > { %1426 = vst [vmem:[%s2480_s20 + $0xd0] sm:$0xff] %v1394_v7  ;;  %v1395_v10 = vmax.f32 %v1356_v8, 0.0  ;;  %v1360_v11 = vadd.f32 %v1359_v9, %v2472_v40 }
 0x32c   : > { %v1361_v12 = vpop.f32.mrf.mxu1 }
 0x32d   : > { %1427 = vst [vmem:[%s2480_s20 + $0xd8] sm:$0xff] %v1395_v10  ;;  %v1396_v29 = vmax.f32 %v1360_v11, 0.0  ;;  %v1362_v13 = vadd.f32 %v1361_v12, %v2476_v24 }
 0x32e   : > { %v1363_v30 = vpop.f32.mrf.mxu1 }
 0x32f   : > { %1428 = vst [vmem:[%s2480_s20 + $0xe0] sm:$0xff] %v1396_v29  ;;  %v1397_v14 = vmax.f32 %v1362_v13, 0.0  ;;  %v1364_v15 = vadd.f32 %v1363_v30, %v2472_v40 }
 0x330   : > { %v1365_v31 = vpop.f32.mrf.mxu1 }
 0x331   : > { %1429 = vst [vmem:[%s2480_s20 + $0xe8] sm:$0xff] %v1397_v14  ;;  %v1398_v17 = vmax.f32 %v1364_v15, 0.0  ;;  %v1366_v32 = vadd.f32 %v1365_v31, %v2476_v24 }
 0x333   : > { %1430 = vst [vmem:[%s2480_s20 + $0xf0] sm:$0xff] %v1398_v17  ;;  %v1399_v42 = vmax.f32 %v1366_v32, 0.0 }
 0x335   : > { %1431 = vst [vmem:[%s2480_s20 + $0xf8] sm:$0xff] %v1399_v42 }
 0x336   : > { %2041 = shalt.err (!%p2038_p3)
}
 0x337   : > { %s2042_s25 = scalar_lea.hbm %s2547_s5, 4096  ;;  %s2046_s8 = scalar_lea.hbm %s2597_s3, 8192 }
 0x338   : > { %p2043_p11 = scmp.ne.s32.totalorder %s2547_s5, %s2042_s25  ;;  %p2047_p4 = scmp.lt.s32.totalorder %s2547_s5, %s2597_s3 }
 0x339   : > { %p2048_p6 = scmp.lt.s32.totalorder %s2046_s8, %s2042_s25 }
 0x33a   : > { %p2044_p9 = pnand %p2043_p11, %p2612_p2 }
 0x33b   : > { %p2049_p8 = por %p2048_p6, %p2047_p4 }
 0x33c   : > { %p2045_p1 = pneg %p2044_p9 }
 0x33e   : > { %p2050_p10 = pnand %p2049_p8, %p2045_p1 }
 0x340   : > { %2053 = shalt.err (!%p2050_p10)
}
 0x341   : > { %s2106_s18 = smov 256   ;;  %s2107_s20 = smov 16  }
 0x342   : > { %1717 = dma.vmem_to_hbm [thread:$0]  (%p2612_p2), %s2549_s28, 4096, %s2547_s5, %s1433_s16, %s2106_s18, %s2106_s18, %s2107_s20  }
 0x343 PF: > { %s1462_s27 = sand.u32 1, %s2084_s12   ;;  %p2613_p7 = scmp.ne.s32.totalorder %s2603_s19, 0 }
 0x344   : > { %p2614_p12 = scmp.ge.s32.totalorder %s2096_s15, 2  ;;  %s1463_s29 = scalar_lea.sflag [#allocation4], %s1462_s27 }
 0x346   : > { %p1731_p13 = pnand %p2614_p12, %p2613_p7 }
 0x348   : > { %p1732_p0 = pneg %p1731_p13 }
 0x34a   : > { %2079 = dma.done.wait (%p1732_p0), %s1463_s29, 4096  }
 0x34b   : > { %2081 = vsyncadd (%p1732_p0), %s1463_s29, 4294963200  ;;  %p17_p5 = scmp.ge.s32.totalorder %s2203_s9, 4   ;;  %s2615_s12 = smov %s2088_s13 }
 0x34c   : > { %s2616_s13 = smov %s2092_s14  ;;  %s2617_s14 = smov %s2212_s17 }
 0x34d   : > { %s2618_s15 = smov %s2203_s9  ;;  %19 = sbr.rel (!%p17_p5) target bundleno = 6 (0x6), region = 89 }
 0x352   :  { %1468 = vsyncpa [#allocation3], 1 }
 0x353   :  { %1470 = vsyncpa [#allocation3 + $0x1], 1 }
 0x354   :  { %1471 = vsyncpa [#allocation6], 1 }
 0x355   :  { %1472 = vsyncpa [#allocation4], 1 }
 0x356   :  { %1474 = vsyncpa [#allocation4 + $0x1], 1 }

</bundles_post_ra>
